<compile_context>
chip_gen: v6e
topology: v6e:2x2x1
jax: 0.10.0
libtpu: 0.0.40
codegen_flags: <defaults>
</compile_context>

<pallas_src>
import functools
import math

import jax
import jax.numpy as jnp
from jax.experimental import pallas as pl
from jax.experimental.pallas import tpu as pltpu


def _round_up(x, m):
    return ((x + m - 1) // m) * m


_VMEM_CAPACITY = None


def _vmem_capacity():
    """Physical per-core VMEM bytes (fallback 64 MiB = v7x, the smallest)."""
    global _VMEM_CAPACITY
    if _VMEM_CAPACITY is None:
        cap = 64 << 20
        try:
            info = pltpu.get_tpu_info()
            cap = int(getattr(info, "vmem_capacity_bytes", cap)) or cap
        except Exception:
            pass
        _VMEM_CAPACITY = cap
    return _VMEM_CAPACITY


def _resident_bytes(tm, C_pad, H_pad):
    """VMEM estimate for the resident-weight path (2 buffers per operand)."""
    return (2 * tm * C_pad * 2            # x tile (bf16, double-buffered)
            + 2 * tm * C_pad * 4          # out tile (f32, double-buffered)
            + 4 * C_pad * H_pad * 2       # W1 + W2 whole arrays (bf16, 2 bufs)
            + 2 * (H_pad + C_pad) * 4     # biases
            + 2 * tm * H_pad * 4)         # hidden activation temporaries


def _stream_bytes(tm, th, C_pad, H_pad):
    """VMEM estimate for the hidden-sliced streaming path."""
    del H_pad
    return (2 * tm * C_pad * 2            # x tile
            + 2 * tm * C_pad * 4          # out tile (f32, accumulated in place)
            + 2 * C_pad * th * 2          # W1 slice (bf16)
            + 2 * th * C_pad * 2          # W2 slice (bf16)
            + 2 * (th + C_pad) * 4        # bias slices
            + 2 * tm * th * 4)            # hidden activation temporaries


def _plan_tiles(M, C_pad, H_pad, budget, force_stream=False):
    """Pick (tm, th, resident) so the tiles fit the VMEM budget."""
    m_ru = _round_up(max(M, 1), 8)
    tm_cands = [t for t in (1024, 512, 256, 128, 64, 32, 16, 8) if t <= m_ru]
    if not tm_cands:
        tm_cands = [m_ru]
    # v7x has two TensorCores: keep >=2 row tiles, but only once each tile can
    # still be >=512 rows (so single-core chips keep high weight-stream AI).
    if m_ru >= 1024:
        cap = max(512, _round_up((m_ru + 1) // 2, 8))
        tm_cands = sorted({min(t, cap) for t in tm_cands}, reverse=True)

    if not force_stream:
        for tm in tm_cands:
            if _resident_bytes(tm, C_pad, H_pad) <= budget:
                return tm, H_pad, True

    th_cands = [t for t in (1024, 512, 256, 128) if t <= H_pad and H_pad % t == 0]
    if not th_cands:
        th_cands = [H_pad]
    for tm in tm_cands:              # tm first: it sets weight-stream intensity
        for th in th_cands:
            if _stream_bytes(tm, th, C_pad, H_pad) <= budget:
                return tm, th, False
    return tm_cands[-1], th_cands[-1], False


# ---------------------------------------------------------------------------
# Kernels
# ---------------------------------------------------------------------------

def _ffn_kernel_resident(x_ref, w1_ref, b1_ref, w2_ref, b2_ref, o_ref):
    """Whole FFN for one (tm, C_pad) row tile; W1/W2 stay VMEM-resident."""
    h = jnp.dot(x_ref[...], w1_ref[...], preferred_element_type=jnp.float32)
    h = jnp.maximum(h + b1_ref[...], 0.0)
    # Re-cast to bf16 for the second MXU pass (one extra rounding step vs.
    # pure f32 accumulation -- fine for inference, covered by tolerance).
    o_ref[...] = (jnp.dot(h.astype(jnp.bfloat16), w2_ref[...],
                          preferred_element_type=jnp.float32)
                  + b2_ref[...]).astype(o_ref.dtype)


def _ffn_kernel_stream(x_ref, w1_ref, b1_ref, w2_ref, b2_ref, o_ref):
    """One (tm, C_pad) row tile x one (th,) hidden slice.

    The output block index is constant across the hk axis, so the f32 output
    tile is VMEM-resident and doubles as the accumulator (no scratch copy).
    """
    hk = pl.program_id(1)

    @pl.when(hk == 0)
    def _init():
        # Fold the second bias into the accumulator init (once per row tile).
        o_ref[...] = jnp.broadcast_to(b2_ref[...], o_ref.shape).astype(o_ref.dtype)

    h = jnp.dot(x_ref[...], w1_ref[...], preferred_element_type=jnp.float32)
    h = jnp.maximum(h + b1_ref[...], 0.0)
    o_ref[...] += jnp.dot(h.astype(jnp.bfloat16), w2_ref[...],
                          preferred_element_type=jnp.float32)


# ---------------------------------------------------------------------------
# Wrappers
# ---------------------------------------------------------------------------

def prepare_ffn_params(w1, b1, w2, b2):
    """Pad to lane-aligned shapes and cast matmul operands to bf16 ONCE.

    Doing this at init time (instead of per call) removes two full weight
    read+write HBM passes (and the re-cast) from every forward call.
    """
    C, H = w1.shape
    C_pad = _round_up(C, 128)
    H_pad = _round_up(H, 128)
    w1_p = jnp.zeros((C_pad, H_pad), jnp.bfloat16).at[:C, :H].set(
        w1.astype(jnp.bfloat16))
    b1_p = jnp.zeros((1, H_pad), jnp.float32).at[:, :H].set(
        b1.reshape(1, H).astype(jnp.float32))
    w2_p = jnp.zeros((H_pad, C_pad), jnp.bfloat16).at[:H, :C].set(
        w2.astype(jnp.bfloat16))
    b2_p = jnp.zeros((1, C_pad), jnp.float32).at[:, :C].set(
        b2.reshape(1, C).astype(jnp.float32))
    return {"w1": w1_p, "b1": b1_p, "w2": w2_p, "b2": b2_p,
            "C": C, "H": H, "C_pad": C_pad, "H_pad": H_pad}


@functools.partial(jax.jit,
                   static_argnames=("C", "tm", "th", "resident", "vmem_limit"))
def _ffn_2d(x2d, w1_p, b1_p, w2_p, b2_p, *, C, tm, th, resident, vmem_limit):
    M = x2d.shape[0]
    C_pad, H_pad = w1_p.shape
    M_pad = _round_up(M, tm)
    aligned = (M_pad == M) and (C_pad == C)

    # Pad + cast x (skip padding entirely when already aligned).
    if aligned:
        x_p = x2d.astype(jnp.bfloat16)
    else:
        x_p = jnp.zeros((M_pad, C_pad), jnp.bfloat16).at[:M, :C].set(
            x2d.astype(jnp.bfloat16))

    num_m = M_pad // tm
    cost = pl.CostEstimate(
        flops=4 * M_pad * C_pad * H_pad,
        transcendentals=0,
        bytes_accessed=int(M_pad * C_pad * (2 + 4)
                           + 4 * C_pad * H_pad * (1 if resident else num_m)
                           + (H_pad + C_pad) * 4))
    cparams = pltpu.CompilerParams(
        dimension_semantics=(("parallel",) if resident
                             else ("parallel", "arbitrary")),
        vmem_limit_bytes=vmem_limit)

    if resident:
        out2d = pl.pallas_call(
            _ffn_kernel_resident,
            out_shape=jax.ShapeDtypeStruct((M_pad, C_pad), jnp.float32),
            grid_spec=pltpu.PrefetchScalarGridSpec(
                num_scalar_prefetch=0,
                grid=(num_m,),
                in_specs=[
                    pl.BlockSpec((tm, C_pad), lambda i: (i, 0)),       # x rows
                    pl.BlockSpec((C_pad, H_pad), lambda i: (0, 0)),    # W1 resident
                    pl.BlockSpec((1, H_pad), lambda i: (0, 0)),        # b1
                    pl.BlockSpec((H_pad, C_pad), lambda i: (0, 0)),    # W2 resident
                    pl.BlockSpec((1, C_pad), lambda i: (0, 0)),        # b2
                ],
                out_specs=pl.BlockSpec((tm, C_pad), lambda i: (i, 0)),
            ),
            compiler_params=cparams,
            cost_estimate=cost,
        )(x_p, w1_p, b1_p, w2_p, b2_p)
    else:
        num_h = H_pad // th
        out2d = pl.pallas_call(
            _ffn_kernel_stream,
            out_shape=jax.ShapeDtypeStruct((M_pad, C_pad), jnp.float32),
            grid_spec=pltpu.PrefetchScalarGridSpec(
                num_scalar_prefetch=0,
                grid=(num_m, num_h),
                in_specs=[
                    pl.BlockSpec((tm, C_pad), lambda i, hk: (i, 0)),    # x rows
                    pl.BlockSpec((C_pad, th), lambda i, hk: (0, hk)),   # W1 slice
                    pl.BlockSpec((1, th), lambda i, hk: (0, hk)),       # b1 slice
                    pl.BlockSpec((th, C_pad), lambda i, hk: (hk, 0)),   # W2 slice
                    pl.BlockSpec((1, C_pad), lambda i, hk: (0, 0)),     # b2
                ],
                out_specs=pl.BlockSpec((tm, C_pad), lambda i, hk: (i, 0)),
            ),
            compiler_params=cparams,
            cost_estimate=cost,
        )(x_p, w1_p, b1_p, w2_p, b2_p)

    if aligned:
        return out2d
    return out2d[:M, :C]


def feed_forward(x, params, *, force_stream=False, tm=None, th=None):
    """Fused Linear(C->4C) -> ReLU -> Linear(4C->C) -> Dropout(eval=identity).

    x: (..., C) float array.  `params` comes from prepare_ffn_params().
    """
    C = params["C"]
    C_pad, H_pad = params["C_pad"], params["H_pad"]
    lead = x.shape[:-1]
    M = int(math.prod(lead))

    capacity = _vmem_capacity()
    # ~48 MiB on v7x (64 MiB/TC), ~96-100 MiB on v5e/v6e (128 MiB).
    budget = min((capacity * 3) // 4, 100 << 20)
    tm_p, th_p, resident = _plan_tiles(M, C_pad, H_pad, budget, force_stream)
    if tm is not None:
        tm_p = _round_up(min(tm, _round_up(max(M, 1), 8)), 8)
    if th is not None:
        assert H_pad % th == 0
        th_p, resident = th, False

    est = (_resident_bytes(tm_p, C_pad, H_pad) if resident
           else _stream_bytes(tm_p, th_p, C_pad, H_pad))
    vmem_limit = int(min(capacity - (2 << 20),
                         max(est * 5 // 4 + (4 << 20), 32 << 20)))

    out2d = _ffn_2d(x.reshape(M, C), params["w1"], params["b1"],
                    params["w2"], params["b2"],
                    C=C, tm=tm_p, th=th_p, resident=resident,
                    vmem_limit=vmem_limit)
    return out2d.reshape(*lead, C)


def init_params(key, n_embd):
    """Deterministic init matching nn.Linear shapes (stored as (in, out))."""
    hidden = 4 * n_embd
    k1, k2, k3, k4 = jax.random.split(key, 4)
    bound1 = 1.0 / jnp.sqrt(n_embd)
    bound2 = 1.0 / jnp.sqrt(hidden)
    w1 = jax.random.uniform(k1, (n_embd, hidden), jnp.float32, -bound1, bound1)
    b1 = jax.random.uniform(k2, (hidden,), jnp.float32, -bound1, bound1)
    w2 = jax.random.uniform(k3, (hidden, n_embd), jnp.float32, -bound2, bound2)
    b2 = jax.random.uniform(k4, (n_embd,), jnp.float32, -bound2, bound2)
    return w1, b1, w2, b2


if __name__ == "__main__":
    # Test 1: small FeedForward matching the torch module (resident-weight path).
    n_embd = 32
    dropout = 0.1          # nn.Dropout in eval mode -> identity
    B, T = 2, 8

    key = jax.random.PRNGKey(0)
    kx, kp, kx2, kp2 = jax.random.split(key, 4)
    x = jax.random.normal(kx, (B, T, n_embd), jnp.float32)
    w1, b1, w2, b2 = init_params(kp, n_embd)
    params = prepare_ffn_params(w1, b1, w2, b2)

    out = jax.block_until_ready(feed_forward(x, params))
    ref = jnp.maximum(x @ w1 + b1, 0.0) @ w2 + b2
    assert out.shape == (B, T, n_embd)
    assert jnp.allclose(out, ref, atol=2e-2, rtol=2e-2), (
        float(jnp.max(jnp.abs(out - ref))))

    # Test 2: exercise the hidden-sliced streaming path (multi-step hk
    # accumulation directly into the output tile) with a slightly wider FFN.
    n_embd2 = 64
    x2 = jax.random.normal(kx2, (B, T, n_embd2), jnp.float32)
    w1b, b1b, w2b, b2b = init_params(kp2, n_embd2)
    params2 = prepare_ffn_params(w1b, b1b, w2b, b2b)
    out2 = jax.block_until_ready(
        feed_forward(x2, params2, force_stream=True, th=128))
    ref2 = jnp.maximum(x2 @ w1b + b1b, 0.0) @ w2b + b2b
    assert out2.shape == (B, T, n_embd2)
    assert jnp.allclose(out2, ref2, atol=2e-2, rtol=2e-2), (
        float(jnp.max(jnp.abs(out2 - ref2))))

    print("KERNEL_OK")
</pallas_src>

<mosaic_0001>
module attributes {stable_mosaic.version = 11 : i64} {
  func.func @_ffn_kernel_resident(%arg0: i32, %arg1: memref<16x128xbf16, #tpu.memory_space<vmem>>, %arg2: memref<128x128xbf16, #tpu.memory_space<vmem>>, %arg3: memref<1x128xf32, #tpu.memory_space<vmem>>, %arg4: memref<128x128xbf16, #tpu.memory_space<vmem>>, %arg5: memref<1x128xf32, #tpu.memory_space<vmem>>, %arg6: memref<16x128xf32, #tpu.memory_space<vmem>>) attributes {dimension_semantics = [#tpu.dimension_semantics<parallel>], iteration_bounds = array<i64: 1>, scalar_prefetch = 0 : i64, scratch_operands = 0 : i64, tpu.core_type = #tpu.core_type<tc>, window_params = [{transform_indices = @transform_0, window_bounds = array<i64: 16, 128>}, {pipeline_mode = #tpu.pipeline_mode<synchronous>, transform_indices = @transform_1, window_bounds = array<i64: 128, 128>}, {pipeline_mode = #tpu.pipeline_mode<synchronous>, transform_indices = @transform_2, window_bounds = array<i64: 1, 128>}, {pipeline_mode = #tpu.pipeline_mode<synchronous>, transform_indices = @transform_3, window_bounds = array<i64: 128, 128>}, {pipeline_mode = #tpu.pipeline_mode<synchronous>, transform_indices = @transform_4, window_bounds = array<i64: 1, 128>}, {transform_indices = @transform_5, window_bounds = array<i64: 16, 128>}]} {
    %c0 = arith.constant 0 : index
    %c0_0 = arith.constant 0 : index
    %0 = vector.load %arg1[%c0, %c0_0] : memref<16x128xbf16, #tpu.memory_space<vmem>>, vector<16x128xbf16>
    %c0_1 = arith.constant 0 : index
    %c0_2 = arith.constant 0 : index
    %1 = vector.load %arg2[%c0_1, %c0_2] : memref<128x128xbf16, #tpu.memory_space<vmem>>, vector<128x128xbf16>
    %cst = arith.constant dense<0.000000e+00> : vector<16x128xf32>
    %2 = tpu.matmul %0, %1, %cst {dimension_numbers = #tpu.dot_dimension_numbers<[1], [0], [0], [1], [0, 0, 1, 1], [], []>} : vector<16x128xbf16>, vector<128x128xbf16>, vector<16x128xf32> -> vector<16x128xf32>
    %c0_3 = arith.constant 0 : index
    %c0_4 = arith.constant 0 : index
    %3 = vector.load %arg3[%c0_3, %c0_4] : memref<1x128xf32, #tpu.memory_space<vmem>>, vector<1x128xf32>
    %4 = vector.broadcast %3 : vector<1x128xf32> to vector<16x128xf32>
    %5 = arith.addf %2, %4 : vector<16x128xf32>
    %cst_5 = arith.constant 0.000000e+00 : f32
    %6 = vector.broadcast %cst_5 : f32 to vector<16x128xf32>
    %7 = arith.maximumf %5, %6 : vector<16x128xf32>
    %8 = arith.truncf %7 : vector<16x128xf32> to vector<16x128xbf16>
    %c0_6 = arith.constant 0 : index
    %c0_7 = arith.constant 0 : index
    %9 = vector.load %arg4[%c0_6, %c0_7] : memref<128x128xbf16, #tpu.memory_space<vmem>>, vector<128x128xbf16>
    %cst_8 = arith.constant dense<0.000000e+00> : vector<16x128xf32>
    %10 = tpu.matmul %8, %9, %cst_8 {dimension_numbers = #tpu.dot_dimension_numbers<[1], [0], [0], [1], [0, 0, 1, 1], [], []>} : vector<16x128xbf16>, vector<128x128xbf16>, vector<16x128xf32> -> vector<16x128xf32>
    %c0_9 = arith.constant 0 : index
    %c0_10 = arith.constant 0 : index
    %11 = vector.load %arg5[%c0_9, %c0_10] : memref<1x128xf32, #tpu.memory_space<vmem>>, vector<1x128xf32>
    %12 = vector.broadcast %11 : vector<1x128xf32> to vector<16x128xf32>
    %13 = arith.addf %10, %12 : vector<16x128xf32>
    %c0_11 = arith.constant 0 : index
    %c0_12 = arith.constant 0 : index
    %14 = vector.load %arg6[%c0_11, %c0_12] : memref<16x128xf32, #tpu.memory_space<vmem>>, vector<16x128xf32>
    tpu.vector_store %arg6[%c0_11, %c0_12], %13 {strides = array<i32>} : memref<16x128xf32, #tpu.memory_space<vmem>>, vector<16x128xf32>,
    return
  }
  func.func @transform_0(%arg0: i32) -> (i32, i32) {
    %c0_i32 = arith.constant 0 : i32
    %c0_i32_0 = arith.constant 0 : i32
    return %arg0, %c0_i32 : i32, i32
  }
  func.func @transform_1(%arg0: i32) -> (i32, i32) {
    %c0_i32 = arith.constant 0 : i32
    %c0_i32_0 = arith.constant 0 : i32
    %c0_i32_1 = arith.constant 0 : i32
    return %c0_i32, %c0_i32_0 : i32, i32
  }
  func.func @transform_2(%arg0: i32) -> (i32, i32) {
    %c0_i32 = arith.constant 0 : i32
    %c0_i32_0 = arith.constant 0 : i32
    %c0_i32_1 = arith.constant 0 : i32
    return %c0_i32, %c0_i32_0 : i32, i32
  }
  func.func @transform_3(%arg0: i32) -> (i32, i32) {
    %c0_i32 = arith.constant 0 : i32
    %c0_i32_0 = arith.constant 0 : i32
    %c0_i32_1 = arith.constant 0 : i32
    return %c0_i32, %c0_i32_0 : i32, i32
  }
  func.func @transform_4(%arg0: i32) -> (i32, i32) {
    %c0_i32 = arith.constant 0 : i32
    %c0_i32_0 = arith.constant 0 : i32
    %c0_i32_1 = arith.constant 0 : i32
    return %c0_i32, %c0_i32_0 : i32, i32
  }
  func.func @transform_5(%arg0: i32) -> (i32, i32) {
    %c0_i32 = arith.constant 0 : i32
    %c0_i32_0 = arith.constant 0 : i32
    return %arg0, %c0_i32 : i32, i32
  }
}

</mosaic_0001>

<bundles_post_ra>
// kernel: _ffn_2d.1
= control target key start
LH: loop header
LB: loop body
LE: loop exit
PB: predicated region body
PF: predicated region fallthrough
CT: control target
= control target key end

     0   :  { %10 = vsyncpa [#allocation3], 0  ;;  %s531_s0 = inlined_call_operand.vmem [shape: bf16[16,128], index: 0, kind: input, shape index: {}]   ;;  %s532_s1 = inlined_call_operand.hbm [shape: bf16[128,128], index: 1, kind: input, shape index: {}]   ;;  %s533_s2 = inlined_call_operand.vmem [shape: f32[1,128], index: 2, kind: input, shape index: {}]   ;;  %s534_s3 = inlined_call_operand.hbm [shape: bf16[128,128], index: 3, kind: input, shape index: {}]   ;;  %s535_s4 = inlined_call_operand.vmem [shape: f32[1,128], index: 4, kind: input, shape index: {}]   ;;  %s536_s5 = inlined_call_operand.hbm [shape: f32[16,128], index: 5, kind: output, shape index: {}]  }
   0x1   :  { %11 = vsyncpa [#allocation6], 0 }
   0x2   :  { %12 = vsyncpa [#allocation4], 0  ;;  %s474_s18 = smov [#allocation2]  }
   0x3   :  { %s20_s19 = sshll.u32 %s474_s18, 4  ;;  %s21_s19 = int_to_ptr.vmem [resolvable:$true] %s20_s19 }
   0x4   :  { %s416_s20 = scalar_lea.vmem %s21_s19, 1024  ;;  %p421_p1 = scmp.lt.s32.totalorder %s21_s19, %s21_s19 }
   0x5   :  { %p417_p0 = scmp.ne.s32.totalorder %s21_s19, %s416_s20  ;;  %p422_p2 = scmp.lt.s32.totalorder %s416_s20, %s416_s20 }
   0x7   :  { %p423_p3 = por %p422_p2, %p421_p1 }
   0x9   :  { %p424_p4 = pnand %p423_p3, %p417_p0 }
   0xb   :  { %427 = shalt.err (!%p424_p4)
}
   0xc   :  { %s475_s21 = smov 64   ;;  %s476_s22 = smov 4  }
   0xd   :  { %26 = dma.hbm_to_vmem [thread:$0]  %s532_s1, 1024, %s21_s19, [#allocation3], %s475_s21, %s475_s21, %s476_s22  }
   0xe   :  { %s477_s25 = smov [#allocation5]  }
   0xf   :  { %s34_s26 = sshll.u32 %s477_s25, 4  ;;  %s35_s26 = int_to_ptr.vmem [resolvable:$true] %s34_s26 }
  0x10   :  { %s436_s27 = scalar_lea.vmem %s35_s26, 1024  ;;  %p441_p6 = scmp.lt.s32.totalorder %s35_s26, %s35_s26 }
  0x11   :  { %p437_p5 = scmp.ne.s32.totalorder %s35_s26, %s436_s27  ;;  %p442_p7 = scmp.lt.s32.totalorder %s436_s27, %s436_s27 }
  0x13   :  { %p443_p8 = por %p442_p7, %p441_p6 }
  0x15   :  { %p444_p9 = pnand %p443_p8, %p437_p5 }
  0x17   :  { %447 = shalt.err (!%p444_p9)
}
  0x18   :  { %40 = dma.hbm_to_vmem [thread:$0]  %s534_s3, 1024, %s35_s26, [#allocation6], %s475_s21, %s475_s21, %s476_s22  }
  0x19   :  { %468 = dma.done.wait [#allocation3], 1024  }
  0x1a   :  { %469 = vsyncadd [#allocation3], 4294966272 }
  0x1b   :  { %470 = dma.done.wait [#allocation6], 1024  }
  0x1c   :  { %471 = vsyncadd [#allocation6], 4294966272  ;;  %v478_v0 = vmov 0.0   ;;  %vm479_vm0 = vmmov 0   ;;  %v391_v1 = vld [vmem:[#allocation2 + $0x38] sm:$0xff]   ;;  %v392_v2 = vld [vmem:[#allocation2 + $0x30] sm:$0xff]  }
  0x1d   :  { %342 = vmatprep.subr.bf16.mxu0 %v478_v0  ;;  %358 = vmatprep.mubr.msk.bf16.mxu0 %vm479_vm0, %v478_v0  ;;  %v393_v3 = vld [vmem:[#allocation2 + $0x28] sm:$0xff]   ;;  %v400_v4 = vld [vmem:[#allocation5 + $0x38] sm:$0xff]   ;;  %v394_v5 = vld [vmem:[#allocation2 + $0x20] sm:$0xff]   ;;  %s480_s8 = smov [#allocation7]  }
  0x1e   :  { %362 = vmatprep.subr.bf16.mxu1 %v478_v0  ;;  %378 = vmatprep.mubr.msk.bf16.mxu1 %vm479_vm0, %v478_v0  ;;  %v401_v6 = vld [vmem:[#allocation5 + $0x30] sm:$0xff]   ;;  %v395_v7 = vld [vmem:[#allocation2 + $0x18] sm:$0xff]   ;;  %v402_v8 = vld [vmem:[#allocation5 + $0x28] sm:$0xff]   ;;  %s292_s9 = sshll.u32 %s480_s8, 4  ;;  %s293_s9 = int_to_ptr.vmem [resolvable:$true] %s292_s9 }
  0x1f   :  { %343 = vmatpush3.bf16.msra.mxu0 %v391_v1  ;;  %363 = vmatpush3.bf16.msra.mxu1 %v400_v4  ;;  %v396_v9 = vld [vmem:[#allocation2 + $0x10] sm:$0xff]   ;;  %v403_v10 = vld [vmem:[#allocation5 + $0x20] sm:$0xff]   ;;  %v397_v11 = vld [vmem:[#allocation2 + $0x8] sm:$0xff]   ;;  %p453_p11 = scmp.lt.s32.totalorder %s293_s9, %s293_s9 }
  0x20   :  { %344 = vmatprep.subr.bf16.mxu0 %v478_v0  ;;  %364 = vmatprep.subr.bf16.mxu1 %v478_v0  ;;  %v404_v12 = vld [vmem:[#allocation5 + $0x18] sm:$0xff]   ;;  %v398_v13 = vld [vmem:[#allocation2] sm:$0xff]   ;;  %v405_v15 = vld [vmem:[#allocation5 + $0x10] sm:$0xff]  }
  0x21   :  { %v399_v14 = vld [vmem:[%s531_s0] sm:$0xff]   ;;  %v406_v16 = vld [vmem:[#allocation5 + $0x8] sm:$0xff]  }
  0x22   :  { %v407_v17 = vld [vmem:[#allocation5] sm:$0xff]  }
  0x23   :  { %345 = vmatpush3.bf16.msra.mxu0 %v392_v2  ;;  %365 = vmatpush3.bf16.msra.mxu1 %v401_v6  ;;  %v305_v18 = vld [vmem:[%s533_s2] ss:$0 sm:$0xff]  ;;  %s448_s2 = scalar_lea.vmem %s293_s9, 256 }
  0x24   :  { %346 = vmatprep.subr.bf16.mxu0 %v478_v0  ;;  %366 = vmatprep.subr.bf16.mxu1 %v478_v0  ;;  %v315_v28 = vld [vmem:[%s535_s4] ss:$0 sm:$0xff]  ;;  %p449_p10 = scmp.ne.s32.totalorder %s293_s9, %s448_s2  ;;  %p454_p12 = scmp.lt.s32.totalorder %s448_s2, %s448_s2 }
  0x26   :  { %p455_p13 = por %p454_p12, %p453_p11 }
  0x27   :  { %347 = vmatpush3.bf16.msra.mxu0 %v393_v3  ;;  %367 = vmatpush3.bf16.msra.mxu1 %v402_v8 }
  0x28   :  { %348 = vmatprep.subr.bf16.mxu0 %v478_v0  ;;  %368 = vmatprep.subr.bf16.mxu1 %v478_v0  ;;  %p456_p0 = pnand %p455_p13, %p449_p10 }
  0x2b   :  { %349 = vmatpush3.bf16.msra.mxu0 %v394_v5  ;;  %369 = vmatpush3.bf16.msra.mxu1 %v403_v10 }
  0x2c   :  { %350 = vmatprep.subr.bf16.mxu0 %v478_v0  ;;  %370 = vmatprep.subr.bf16.mxu1 %v478_v0 }
  0x2f   :  { %351 = vmatpush3.bf16.msra.mxu0 %v395_v7  ;;  %371 = vmatpush3.bf16.msra.mxu1 %v404_v12 }
  0x30   :  { %352 = vmatprep.subr.bf16.mxu0 %v478_v0  ;;  %372 = vmatprep.subr.bf16.mxu1 %v478_v0 }
  0x33   :  { %353 = vmatpush3.bf16.msra.mxu0 %v396_v9  ;;  %373 = vmatpush3.bf16.msra.mxu1 %v405_v15 }
  0x34   :  { %354 = vmatprep.subr.bf16.mxu0 %v478_v0  ;;  %374 = vmatprep.subr.bf16.mxu1 %v478_v0 }
  0x37   :  { %355 = vmatpush3.bf16.msra.mxu0 %v397_v11  ;;  %375 = vmatpush3.bf16.msra.mxu1 %v406_v16 }
  0x38   :  { %356 = vmatprep.subr.bf16.mxu0 %v478_v0  ;;  %376 = vmatprep.subr.bf16.mxu1 %v478_v0 }
  0x3b   :  { %357 = vmatpush3.bf16.msra.mxu0 %v398_v13  ;;  %377 = vmatpush3.bf16.msra.mxu1 %v407_v17 }
  0x3e   :  { %359 = vmatmul.mubr.bf16.vlgmr.msra.gmra.mxu0 %v399_v14 }
  0xfe   :  { %v163_v19 = vpop.f32.mrf.mxu0 }
  0xff   :  { %v164_v21 = vadd.f32 %v305_v18, %v163_v19 }
 0x100   :  { %v360_v20 = vpop.f32.mrf.mxu0 }
 0x101   :  { %v170_v25 = vmax.f32 %v164_v21, 0.0 }
 0x102   :  { %v166_v22 = vpop.f32.mrf.mxu0 }
 0x103   :  { %v167_v23 = vadd.f32 %v305_v18, %v166_v22 }
 0x104   :  { %v361_v24 = vpop.f32.mrf.mxu0 }
 0x105   :  { %v171_v26 = vmax.f32 %v167_v23, 0.0 }
 0x107   :  { %v172_v27 = vpack.c.bf16 %v171_v26, %v170_v25 }
 0x109   :  { %379 = vmatmul.mubr.bf16.vlgmr.msra.gmra.mxu1 %v172_v27 }
 0x1c9   :  { %v278_v29 = vpop.f32.mrf.mxu1 }
 0x1ca   :  { %v279_v30 = vadd.f32 %v315_v28, %v278_v29 }
 0x1cb   :  { %v380_v31 = vpop.f32.mrf.mxu1 }
 0x1cc   :  { %285 = vst [vmem:[#allocation7] sm:$0xff] %v279_v30 }
 0x1cd   :  { %v281_v32 = vpop.f32.mrf.mxu1 }
 0x1ce   :  { %v282_v33 = vadd.f32 %v315_v28, %v281_v32 }
 0x1cf   :  { %v381_v34 = vpop.f32.mrf.mxu1 }
 0x1d0   :  { %286 = vst [vmem:[#allocation7 + $0x8] sm:$0xff] %v282_v33 }
 0x1d1   :  { %459 = shalt.err (!%p456_p0)
}
 0x1d2   :  { %s481_s10 = smov 128   ;;  %s482_s4 = smov 8  }
 0x1d3   :  { %298 = dma.vmem_to_hbm [thread:$0]  %s293_s9, 256, %s536_s5, [#allocation4], %s481_s10, %s481_s10, %s482_s4  }
 0x1d4   :  { %472 = dma.done.wait [#allocation4], 256  }
 0x1d5   :  { %473 = vsyncadd [#allocation4], 4294967040 }
 0x1d6   :  { %302 = vsyncpa [#allocation3], 1 }
 0x1d7   :  { %303 = vsyncpa [#allocation6], 1 }
 0x1d8   :  { %304 = vsyncpa [#allocation4], 1 }

</bundles_post_ra>
